<compile_context>
chip_gen: v7x
topology: tpu7x:2x2x1
jax: 0.10.0
libtpu: 0.0.40
codegen_flags: <defaults>
</compile_context>

<pallas_src>
import math

import jax
import jax.numpy as jnp
from jax import lax
from jax.experimental import pallas as pl
from jax.experimental.pallas import tpu as pltpu

# small, forward-consistent shapes
B, T, D = 2, 8, 32          # batch, seq len, encoder hidden size
K = 4                       # avg_last_k
H1, H2, NBINS = 256, 128, 21
VOCAB = 50
EXPECTED_SEQ_LEN = 512      # AttentionPooling(expected_seq_len=512)
LN_EPS = 1e-5
OUT_W = 3 * H2              # 384: [logits | probs | expected], each 128-lane aligned


def _gelu_exact(x):
    # matches torch.nn.GELU() default (erf-based, approximate='none')
    return 0.5 * x * (1.0 + lax.erf(x * (1.0 / math.sqrt(2.0))))


def esl_kernel(hs_ref, mask_ref, wcat_ref, pvec_ref, wr23_ref, out_ref):
    Kq, Bq, Tq, Dq = hs_ref.shape

    # ---- avg_last_k mean fused in: sum the K slabs in VMEM (1/K folded into wcat) ----
    h_sum = jnp.sum(hs_ref[...], axis=0)                               # (B, T, D)
    h2d = h_sum.reshape(Bq * Tq, Dq)                                   # (B*T, D)

    # ---- fused projection: [attn_proj Lin(D,256) | reg_head Lin(D,256,bias=False)] ----
    Y = jnp.dot(h2d, wcat_ref[...], preferred_element_type=jnp.float32)  # (B*T, 2*H1)
    Ya = Y[:, :H1].reshape(Bq, Tq, H1)                                 # attention branch
    Yr = Y[:, H1:].reshape(Bq, Tq, H1)                                 # reg-head Lin1 branch

    pv = pvec_ref[...]                                                 # (8, H1) packed params
    b1, w2s, ln_g, ln_b = pv[0:1, :], pv[1:2, :], pv[2:3, :], pv[3:4, :]
    bins = pv[4:5, 0:H2]                                               # (1, 128) zero-padded bins

    # ---- AttentionPooling: tanh -> (w2 * scale*log(T)) lane reduction -> masked softmax ----
    a = jnp.tanh(Ya + b1)                                              # (B, T, H1)
    s = jnp.sum(a * w2s, axis=-1, keepdims=True)                       # (B, T, 1) scaled scores
    m = mask_ref[...]                                                  # (B, T, 1)
    s = jnp.where(m == 0.0, -1e9, s)                                   # finite fill == PyTorch (no NaN even if fully padded)
    smax = jnp.max(s, axis=1, keepdims=True)
    e = jnp.exp(s - smax)
    denom = jnp.sum(e, axis=1, keepdims=True)
    # EUP approx reciprocal: the common scale error on attn is absorbed by the LayerNorm below.
    attn = e * pl.reciprocal(denom, approx=True)                       # softmax over T

    # x1 = pooled @ wr1 == sum_t attn_t * (h_t @ wr1)   (wr1 has no bias)
    x1 = jnp.sum(attn * Yr, axis=1)                                    # (B, H1)

    # ---- reg_head: LayerNorm -> GELU -> Lin(256,128) -> GELU -> Lin(128,21 zero-padded to 128) ----
    mu = jnp.mean(x1, axis=-1, keepdims=True)
    var = jnp.mean((x1 - mu) ** 2, axis=-1, keepdims=True)
    xn = (x1 - mu) * lax.rsqrt(var + LN_EPS) * ln_g + ln_b
    h1 = _gelu_exact(xn)
    wr2 = wr23_ref[0:H1, :]                                            # (256, 128)
    wr3p = wr23_ref[H1:H1 + H2, :]                                     # (128, 128), cols >= 21 are zero
    h2 = _gelu_exact(jnp.dot(h1, wr2, preferred_element_type=jnp.float32))     # (B, 128)
    logits_p = jnp.dot(h2, wr3p, preferred_element_type=jnp.float32)   # (B, 128); lanes >= 21 exactly 0

    # ---- softmax over the 21 valid bins (padded lanes -> -inf) + expected score ----
    lane = lax.broadcasted_iota(jnp.int32, (Bq, H2), 1)
    logits_m = jnp.where(lane < NBINS, logits_p, -jnp.inf)
    lmax = jnp.max(logits_m, axis=-1, keepdims=True)
    pe = jnp.exp(logits_m - lmax)                                      # padded lanes -> exactly 0
    probs = pe / jnp.sum(pe, axis=-1, keepdims=True)                   # exact divide (output-facing, tiny)
    expected = jnp.sum(probs * bins, axis=-1, keepdims=True)           # (B, 1)

    # ---- single full-width lane-aligned store ----
    packed = jnp.concatenate(
        [logits_p, probs, jnp.broadcast_to(expected, (Bq, H2))], axis=-1)      # (B, 384)
    out_ref[...] = packed


def prepare_params(params, seq_len):
    """Hoisted weight prep: run ONCE per weight update / sequence length, not per forward."""
    sf = params["scale"][0, 0] * math.log(seq_len)                     # scale * log(T)
    # fuse attn_proj Lin1 and reg_head Lin1; fold the 1/K of the layer mean into the weight
    wcat = jnp.concatenate([params["w1"], params["wr1"]], axis=1) * (1.0 / K)   # (D, 2*H1)
    w2s = params["w2"].T * sf                                          # (1, H1) scaled score weight
    bins_pad = jnp.zeros((1, H1), jnp.float32).at[:, :NBINS].set(params["bins"])
    pvec = jnp.concatenate(
        [params["b1"], w2s, params["ln_g"], params["ln_b"], bins_pad,
         jnp.zeros((3, H1), jnp.float32)], axis=0)                     # (8, H1)
    wr3p = jnp.zeros((H2, H2), jnp.float32).at[:, :NBINS].set(params["wr3"])    # (128, 128)
    wr23 = jnp.concatenate([params["wr2"], wr3p], axis=0)              # (384, 128)
    return {"wcat": wcat, "pvec": pvec, "wr23": wr23}


@jax.jit
def esl_forward(hs_stack, attn_mask, prep):
    """hs_stack: (K, B, T, D), attn_mask: (B, T), prep: output of prepare_params."""
    Kq, Bq, Tq, Dq = hs_stack.shape
    mask3 = attn_mask.astype(jnp.float32)[:, :, None]                  # (B, T, 1)

    out = pl.pallas_call(
        esl_kernel,
        out_shape=jax.ShapeDtypeStruct((Bq, OUT_W), jnp.float32),
        in_specs=[pl.BlockSpec(memory_space=pltpu.MemorySpace.VMEM)] * 5,
        out_specs=pl.BlockSpec(memory_space=pltpu.MemorySpace.VMEM),
    )(hs_stack.astype(jnp.float32), mask3, prep["wcat"], prep["pvec"], prep["wr23"])

    return {"logits": out[:, :NBINS],
            "probs": out[:, H2:H2 + NBINS],
            "expected_score": out[:, 2 * H2]}


def synthetic_encoder(input_ids, emb, layer_ws):
    # TODO(synk): pretrained HF BERT (AutoModel) cannot be reproduced in-script;
    # replaced with a deterministic synthetic stack of K hidden-state layers.
    h0 = emb[input_ids]                          # (B, T, D)
    x, layers = h0, []
    for W in layer_ws:
        x = jnp.tanh(x @ W) + h0
        layers.append(x)
    return jnp.stack(layers, axis=0)             # (K, B, T, D)


def ref_forward(hs_stack, attn_mask, params):
    # pure-JAX reference mirroring the PyTorch forward semantics
    h = jnp.mean(hs_stack, axis=0)                                   # (B, T, D)
    a = jnp.tanh(h @ params["w1"] + params["b1"])                    # (B, T, 256)
    raw = a @ params["w2"]                                           # (B, T, 1)
    scaled = raw * (params["scale"][0, 0] * math.log(T))
    m = attn_mask[:, :, None]
    scaled = jnp.where(m == 0.0, -1e9, scaled)
    w = jax.nn.softmax(scaled, axis=1)
    pooled = jnp.sum(w * h, axis=1)                                  # (B, D)
    x1 = pooled @ params["wr1"]
    mu = x1.mean(-1, keepdims=True)
    var = ((x1 - mu) ** 2).mean(-1, keepdims=True)
    xn = (x1 - mu) / jnp.sqrt(var + LN_EPS) * params["ln_g"] + params["ln_b"]
    h1 = _gelu_exact(xn)
    h2 = _gelu_exact(h1 @ params["wr2"])
    logits = h2 @ params["wr3"]
    probs = jax.nn.softmax(logits, axis=-1)
    exp = jnp.sum(probs * params["bins"], axis=-1)
    return logits, probs, exp


def init_params(key):
    ks = jax.random.split(key, 8)
    n = lambda k, s, sd: (jax.random.normal(k, s, jnp.float32) * sd)
    return {
        "scale": jnp.full((1, 1), 1.0 / math.log(EXPECTED_SEQ_LEN), jnp.float32),
        "w1": n(ks[0], (D, H1), 0.05),
        "b1": n(ks[1], (1, H1), 0.02),
        "w2": n(ks[2], (H1, 1), 0.05),
        "wr1": n(ks[3], (D, H1), 0.05),
        "ln_g": jnp.ones((1, H1), jnp.float32),
        "ln_b": jnp.zeros((1, H1), jnp.float32),
        "wr2": n(ks[4], (H1, H2), 0.05),
        "wr3": n(ks[5], (H2, NBINS), 0.05),
        "bins": jnp.linspace(0.0, 10.0, NBINS, dtype=jnp.float32).reshape(1, NBINS),
    }


if __name__ == "__main__":
    key = jax.random.PRNGKey(0)
    k_ids, k_emb, k_lay, k_par = jax.random.split(key, 4)

    input_ids = jax.random.randint(k_ids, (B, T), 0, VOCAB)
    # second example has padding on the last 3 tokens to exercise masking
    attention_mask = jnp.array(
        [[1.0] * T,
         [1.0] * (T - 3) + [0.0] * 3], dtype=jnp.float32)

    emb = jax.random.normal(k_emb, (VOCAB, D), jnp.float32) * 0.1
    layer_ws = [jax.random.normal(k, (D, D), jnp.float32) * 0.1
                for k in jax.random.split(k_lay, K)]
    params = init_params(k_par)

    hs_stack = synthetic_encoder(input_ids, emb, layer_ws)           # (K, B, T, D)

    prep = prepare_params(params, T)                                 # hoisted: once per weights/seq_len
    out = esl_forward(hs_stack, attention_mask, prep)
    jax.block_until_ready(out)

    ref_logits, ref_probs, ref_exp = ref_forward(hs_stack, attention_mask, params)
    assert jnp.allclose(out["logits"], ref_logits, atol=1e-4), "logits mismatch"
    assert jnp.allclose(out["probs"], ref_probs, atol=5e-5), "probs mismatch"
    assert jnp.allclose(out["expected_score"], ref_exp, atol=5e-4), "score mismatch"

    print("KERNEL_OK")
</pallas_src>

<mosaic_0001>
module attributes {stable_mosaic.version = 11 : i64} {
  func.func @esl_kernel(%arg0: memref<4x2x8x32xf32, #tpu.memory_space<vmem>>, %arg1: memref<2x8x1xf32, #tpu.memory_space<vmem>>, %arg2: memref<32x512xf32, #tpu.memory_space<vmem>>, %arg3: memref<8x256xf32, #tpu.memory_space<vmem>>, %arg4: memref<384x128xf32, #tpu.memory_space<vmem>>, %arg5: memref<2x384xf32, #tpu.memory_space<vmem>>) attributes {dimension_semantics = [], scalar_prefetch = 0 : i64, scratch_operands = 0 : i64, tpu.core_type = #tpu.core_type<tc>} {
    %c0 = arith.constant 0 : index
    %c0_0 = arith.constant 0 : index
    %c0_1 = arith.constant 0 : index
    %c0_2 = arith.constant 0 : index
    %0 = vector.load %arg0[%c0, %c0_0, %c0_1, %c0_2] : memref<4x2x8x32xf32, #tpu.memory_space<vmem>>, vector<4x2x8x32xf32>
    %cst = arith.constant dense<0.000000e+00> : vector<2x8x32xf32>
    %1 = vector.multi_reduction <add>, %0, %cst [0] : vector<4x2x8x32xf32> to vector<2x8x32xf32>
    %2 = vector.shape_cast %1 : vector<2x8x32xf32> to vector<16x32xf32>
    %c0_3 = arith.constant 0 : index
    %c0_4 = arith.constant 0 : index
    %3 = vector.load %arg2[%c0_3, %c0_4] : memref<32x512xf32, #tpu.memory_space<vmem>>, vector<32x512xf32>
    %cst_5 = arith.constant dense<0.000000e+00> : vector<16x512xf32>
    %4 = tpu.matmul %2, %3, %cst_5 {dimension_numbers = #tpu.dot_dimension_numbers<[1], [0], [0], [1], [0, 0, 1, 1], [], []>} : vector<16x32xf32>, vector<32x512xf32>, vector<16x512xf32> -> vector<16x512xf32>
    %5 = vector.extract_strided_slice %4 {offsets = [0, 0], sizes = [16, 256], strides = [1, 1]} : vector<16x512xf32> to vector<16x256xf32>
    %6 = vector.shape_cast %5 : vector<16x256xf32> to vector<2x8x256xf32>
    %7 = vector.extract_strided_slice %4 {offsets = [0, 256], sizes = [16, 256], strides = [1, 1]} : vector<16x512xf32> to vector<16x256xf32>
    %8 = vector.shape_cast %7 : vector<16x256xf32> to vector<2x8x256xf32>
    %c0_6 = arith.constant 0 : index
    %c0_7 = arith.constant 0 : index
    %9 = vector.load %arg3[%c0_6, %c0_7] : memref<8x256xf32, #tpu.memory_space<vmem>>, vector<8x256xf32>
    %10 = vector.extract_strided_slice %9 {offsets = [0, 0], sizes = [1, 256], strides = [1, 1]} : vector<8x256xf32> to vector<1x256xf32>
    %11 = vector.extract_strided_slice %9 {offsets = [1, 0], sizes = [1, 256], strides = [1, 1]} : vector<8x256xf32> to vector<1x256xf32>
    %12 = vector.extract_strided_slice %9 {offsets = [2, 0], sizes = [1, 256], strides = [1, 1]} : vector<8x256xf32> to vector<1x256xf32>
    %13 = vector.extract_strided_slice %9 {offsets = [3, 0], sizes = [1, 256], strides = [1, 1]} : vector<8x256xf32> to vector<1x256xf32>
    %14 = vector.extract_strided_slice %9 {offsets = [4, 0], sizes = [1, 128], strides = [1, 1]} : vector<8x256xf32> to vector<1x128xf32>
    %15 = vector.shape_cast %10 : vector<1x256xf32> to vector<1x1x256xf32>
    %16 = vector.broadcast %15 : vector<1x1x256xf32> to vector<2x8x256xf32>
    %17 = arith.addf %6, %16 : vector<2x8x256xf32>
    %18 = math.tanh %17 : vector<2x8x256xf32>
    %19 = vector.shape_cast %11 : vector<1x256xf32> to vector<1x1x256xf32>
    %20 = vector.broadcast %19 : vector<1x1x256xf32> to vector<2x8x256xf32>
    %21 = arith.mulf %18, %20 : vector<2x8x256xf32>
    %cst_8 = arith.constant dense<0.000000e+00> : vector<2x8xf32>
    %22 = vector.multi_reduction <add>, %21, %cst_8 [2] : vector<2x8x256xf32> to vector<2x8xf32>
    %23 = vector.shape_cast %22 : vector<2x8xf32> to vector<2x8x1xf32>
    %c0_9 = arith.constant 0 : index
    %c0_10 = arith.constant 0 : index
    %c0_11 = arith.constant 0 : index
    %24 = vector.load %arg1[%c0_9, %c0_10, %c0_11] : memref<2x8x1xf32, #tpu.memory_space<vmem>>, vector<2x8x1xf32>
    %cst_12 = arith.constant 0.000000e+00 : f32
    %25 = vector.broadcast %cst_12 : f32 to vector<2x8x1xf32>
    %26 = arith.cmpf oeq, %24, %25 : vector<2x8x1xf32>
    %cst_13 = arith.constant -1.000000e+09 : f32
    %27 = vector.broadcast %cst_13 : f32 to vector<2x8x1xf32>
    %28 = arith.select %26, %27, %23 : vector<2x8x1xi1>, vector<2x8x1xf32>
    %cst_14 = arith.constant dense<0xFF800000> : vector<2x1xf32>
    %29 = vector.multi_reduction <maximumf>, %28, %cst_14 [1] : vector<2x8x1xf32> to vector<2x1xf32>
    %30 = vector.shape_cast %29 : vector<2x1xf32> to vector<2x1x1xf32>
    %31 = vector.broadcast %30 : vector<2x1x1xf32> to vector<2x8x1xf32>
    %32 = arith.subf %28, %31 : vector<2x8x1xf32>
    %33 = math.exp %32 : vector<2x8x1xf32>
    %cst_15 = arith.constant dense<0.000000e+00> : vector<2x1xf32>
    %34 = vector.multi_reduction <add>, %33, %cst_15 [1] : vector<2x8x1xf32> to vector<2x1xf32>
    %35 = vector.shape_cast %34 : vector<2x1xf32> to vector<2x1x1xf32>
    %36 = tpu.reciprocal %35 {approx = true} : vector<2x1x1xf32> -> vector<2x1x1xf32>
    %37 = vector.broadcast %36 : vector<2x1x1xf32> to vector<2x8x1xf32>
    %38 = arith.mulf %33, %37 : vector<2x8x1xf32>
    %39 = vector.broadcast %38 : vector<2x8x1xf32> to vector<2x8x256xf32>
    %40 = arith.mulf %39, %8 : vector<2x8x256xf32>
    %cst_16 = arith.constant dense<0.000000e+00> : vector<2x256xf32>
    %41 = vector.multi_reduction <add>, %40, %cst_16 [1] : vector<2x8x256xf32> to vector<2x256xf32>
    %cst_17 = arith.constant dense<0.000000e+00> : vector<2xf32>
    %42 = vector.multi_reduction <add>, %41, %cst_17 [1] : vector<2x256xf32> to vector<2xf32>
    %43 = vector.shape_cast %42 : vector<2xf32> to vector<2x1xf32>
    %cst_18 = arith.constant 2.560000e+02 : f32
    %44 = vector.broadcast %cst_18 : f32 to vector<2x1xf32>
    %45 = arith.divf %43, %44 : vector<2x1xf32>
    %46 = vector.broadcast %45 : vector<2x1xf32> to vector<2x256xf32>
    %47 = arith.subf %41, %46 : vector<2x256xf32>
    %48 = arith.mulf %47, %47 : vector<2x256xf32>
    %cst_19 = arith.constant dense<0.000000e+00> : vector<2xf32>
    %49 = vector.multi_reduction <add>, %48, %cst_19 [1] : vector<2x256xf32> to vector<2xf32>
    %50 = vector.shape_cast %49 : vector<2xf32> to vector<2x1xf32>
    %cst_20 = arith.constant 2.560000e+02 : f32
    %51 = vector.broadcast %cst_20 : f32 to vector<2x1xf32>
    %52 = arith.divf %50, %51 : vector<2x1xf32>
    %53 = vector.broadcast %45 : vector<2x1xf32> to vector<2x256xf32>
    %54 = arith.subf %41, %53 : vector<2x256xf32>
    %cst_21 = arith.constant 9.99999974E-6 : f32
    %55 = vector.broadcast %cst_21 : f32 to vector<2x1xf32>
    %56 = arith.addf %52, %55 : vector<2x1xf32>
    %57 = math.rsqrt %56 : vector<2x1xf32>
    %58 = vector.broadcast %57 : vector<2x1xf32> to vector<2x256xf32>
    %59 = arith.mulf %54, %58 : vector<2x256xf32>
    %60 = vector.broadcast %12 : vector<1x256xf32> to vector<2x256xf32>
    %61 = arith.mulf %59, %60 : vector<2x256xf32>
    %62 = vector.broadcast %13 : vector<1x256xf32> to vector<2x256xf32>
    %63 = arith.addf %61, %62 : vector<2x256xf32>
    %cst_22 = arith.constant 5.000000e-01 : f32
    %64 = vector.broadcast %cst_22 : f32 to vector<2x256xf32>
    %65 = arith.mulf %64, %63 : vector<2x256xf32>
    %cst_23 = arith.constant 0.707106769 : f32
    %66 = vector.broadcast %cst_23 : f32 to vector<2x256xf32>
    %67 = arith.mulf %63, %66 : vector<2x256xf32>
    %68 = math.erf %67 : vector<2x256xf32>
    %cst_24 = arith.constant 1.000000e+00 : f32
    %69 = vector.broadcast %cst_24 : f32 to vector<2x256xf32>
    %70 = arith.addf %69, %68 : vector<2x256xf32>
    %71 = arith.mulf %65, %70 : vector<2x256xf32>
    %c0_25 = arith.constant 0 : index
    %c0_26 = arith.constant 0 : index
    %72 = vector.load %arg4[%c0_25, %c0_26] : memref<384x128xf32, #tpu.memory_space<vmem>>, vector<256x128xf32>
    %c256 = arith.constant 256 : index
    %c0_27 = arith.constant 0 : index
    %73 = vector.load %arg4[%c256, %c0_27] : memref<384x128xf32, #tpu.memory_space<vmem>>, vector<128x128xf32>
    %cst_28 = arith.constant dense<0.000000e+00> : vector<2x128xf32>
    %74 = tpu.matmul %71, %72, %cst_28 {dimension_numbers = #tpu.dot_dimension_numbers<[1], [0], [0], [1], [0, 0, 1, 1], [], []>} : vector<2x256xf32>, vector<256x128xf32>, vector<2x128xf32> -> vector<2x128xf32>
    %cst_29 = arith.constant 5.000000e-01 : f32
    %75 = vector.broadcast %cst_29 : f32 to vector<2x128xf32>
    %76 = arith.mulf %75, %74 : vector<2x128xf32>
    %cst_30 = arith.constant 0.707106769 : f32
    %77 = vector.broadcast %cst_30 : f32 to vector<2x128xf32>
    %78 = arith.mulf %74, %77 : vector<2x128xf32>
    %79 = math.erf %78 : vector<2x128xf32>
    %cst_31 = arith.constant 1.000000e+00 : f32
    %80 = vector.broadcast %cst_31 : f32 to vector<2x128xf32>
    %81 = arith.addf %80, %79 : vector<2x128xf32>
    %82 = arith.mulf %76, %81 : vector<2x128xf32>
    %cst_32 = arith.constant dense<0.000000e+00> : vector<2x128xf32>
    %83 = tpu.matmul %82, %73, %cst_32 {dimension_numbers = #tpu.dot_dimension_numbers<[1], [0], [0], [1], [0, 0, 1, 1], [], []>} : vector<2x128xf32>, vector<128x128xf32>, vector<2x128xf32> -> vector<2x128xf32>
    %84 = tpu.iota {dimensions = array<i32: 1>} : vector<2x128xi32>
    %c21_i32 = arith.constant 21 : i32
    %85 = vector.broadcast %c21_i32 : i32 to vector<2x128xi32>
    %86 = arith.cmpi slt, %84, %85 : vector<2x128xi32>
    %cst_33 = arith.constant 0xFF800000 : f32
    %87 = vector.broadcast %cst_33 : f32 to vector<2x128xf32>
    %88 = arith.select %86, %83, %87 : vector<2x128xi1>, vector<2x128xf32>
    %cst_34 = arith.constant dense<0xFF800000> : vector<2xf32>
    %89 = vector.multi_reduction <maximumf>, %88, %cst_34 [1] : vector<2x128xf32> to vector<2xf32>
    %90 = vector.shape_cast %89 : vector<2xf32> to vector<2x1xf32>
    %91 = vector.broadcast %90 : vector<2x1xf32> to vector<2x128xf32>
    %92 = arith.subf %88, %91 : vector<2x128xf32>
    %93 = math.exp %92 : vector<2x128xf32>
    %cst_35 = arith.constant dense<0.000000e+00> : vector<2xf32>
    %94 = vector.multi_reduction <add>, %93, %cst_35 [1] : vector<2x128xf32> to vector<2xf32>
    %95 = vector.shape_cast %94 : vector<2xf32> to vector<2x1xf32>
    %96 = vector.broadcast %95 : vector<2x1xf32> to vector<2x128xf32>
    %97 = arith.divf %93, %96 : vector<2x128xf32>
    %98 = vector.broadcast %14 : vector<1x128xf32> to vector<2x128xf32>
    %99 = arith.mulf %97, %98 : vector<2x128xf32>
    %cst_36 = arith.constant dense<0.000000e+00> : vector<2xf32>
    %100 = vector.multi_reduction <add>, %99, %cst_36 [1] : vector<2x128xf32> to vector<2xf32>
    %101 = vector.shape_cast %100 : vector<2xf32> to vector<2x1xf32>
    %102 = vector.shape_cast %101 : vector<2x1xf32> to vector<2x1xf32>
    %103 = vector.broadcast %102 : vector<2x1xf32> to vector<2x128xf32>
    %104 = tpu.concatenate %83, %97, %103 in 1 : vector<2x128xf32>, vector<2x128xf32>, vector<2x128xf32> -> vector<2x384xf32>
    %c0_37 = arith.constant 0 : index
    %c0_38 = arith.constant 0 : index
    %105 = vector.load %arg5[%c0_37, %c0_38] : memref<2x384xf32, #tpu.memory_space<vmem>>, vector<2x384xf32>
    tpu.vector_store %arg5[%c0_37, %c0_38], %104 {strides = array<i32>} : memref<2x384xf32, #tpu.memory_space<vmem>>, vector<2x384xf32>,
    return
  }
}

</mosaic_0001>

<bundles_post_ra>
// kernel: esl_forward.1
= control target key start
LH: loop header
LB: loop body
LE: loop exit
PB: predicated region body
PF: predicated region fallthrough
CT: control target
= control target key end

     0   :  { %10 = vsyncpa [#allocation3], 0  ;;  %s1188_s0 = inlined_call_operand.hbm [shape: f32[4,2,8,32], index: 0, kind: input, shape index: {}]   ;;  %s1189_s1 = inlined_call_operand.vmem [shape: f32[2,8,1], index: 1, kind: input, shape index: {}]   ;;  %s1190_s2 = inlined_call_operand.hbm [shape: f32[32,512], index: 2, kind: input, shape index: {}]   ;;  %s1191_s3 = inlined_call_operand.vmem [shape: f32[8,256], index: 3, kind: input, shape index: {}]   ;;  %s1192_s4 = inlined_call_operand.hbm [shape: f32[384,128], index: 4, kind: input, shape index: {}]   ;;  %s1193_s5 = inlined_call_operand.vmem [shape: f32[2,384], index: 5, kind: output, shape index: {}]  }
   0x1   :  { %11 = vsyncpa [#allocation5], 0  ;;  %s1010_s18 = smov [#allocation4]   ;;  %s940_s22 = scalar_lea.hbm %s1190_s2, 2048 }
   0x2   :  { %s31_s19 = sshll.u32 %s1010_s18, 4  ;;  %p941_p0 = scmp.ne.s32.totalorder %s1190_s2, %s940_s22  ;;  %s32_s19 = int_to_ptr.vmem [resolvable:$true] %s31_s19 }
   0x3   :  { %p944_p1 = scmp.lt.u32.totalorder %s940_s22, %s1190_s2 }
   0x5   :  { %p946_p2 = pnand %p944_p1, %p941_p0 }
   0x7   :  { %949 = shalt.err (!%p946_p2)
}
   0x8   :  { %s950_s27 = scalar_lea.vmem %s32_s19, 2048  ;;  %p955_p4 = scmp.lt.s32.totalorder %s32_s19, %s32_s19 }
   0x9   :  { %p951_p3 = scmp.ne.s32.totalorder %s32_s19, %s950_s27  ;;  %p956_p5 = scmp.lt.s32.totalorder %s950_s27, %s950_s27 }
   0xb   :  { %p957_p6 = por %p956_p5, %p955_p4 }
   0xd   :  { %p958_p7 = pnand %p957_p6, %p951_p3 }
   0xf   :  { %961 = shalt.err (!%p958_p7)
}
  0x10   :  { %s1011_s28 = smov 512   ;;  %s1012_s29 = smov 32  }
  0x11   :  { %37 = dma.hbm_to_vmem [thread:$0]  %s1190_s2, 2048, %s32_s19, [#allocation5], %s1011_s28, %s1011_s28, %s1012_s29  }
  0x12   :  { %s1013_s7 = smov [#allocation2]   ;;  %s962_s11 = scalar_lea.hbm %s1188_s0, 1024 }
  0x13   :  { %s17_s8 = sshll.u32 %s1013_s7, 4  ;;  %p963_p8 = scmp.ne.s32.totalorder %s1188_s0, %s962_s11  ;;  %s18_s8 = int_to_ptr.vmem [resolvable:$true] %s17_s8 }
  0x14   :  { %p966_p9 = scmp.lt.u32.totalorder %s962_s11, %s1188_s0 }
  0x16   :  { %p968_p10 = pnand %p966_p9, %p963_p8 }
  0x18   :  { %971 = shalt.err (!%p968_p10)
}
  0x19   :  { %s972_s16 = scalar_lea.vmem %s18_s8, 1024  ;;  %p977_p12 = scmp.lt.s32.totalorder %s18_s8, %s18_s8 }
  0x1a   :  { %p973_p11 = scmp.ne.s32.totalorder %s18_s8, %s972_s16  ;;  %p978_p13 = scmp.lt.s32.totalorder %s972_s16, %s972_s16 }
  0x1c   :  { %p979_p0 = por %p978_p13, %p977_p12 }
  0x1e   :  { %p980_p1 = pnand %p979_p0, %p973_p11 }
  0x20   :  { %983 = shalt.err (!%p980_p1)
}
  0x21   :  { %s1014_s2 = smov 128   ;;  %s1015_s17 = smov 8  }
  0x22   :  { %23 = dma.hbm_to_vmem [thread:$0]  %s1188_s0, 1024, %s18_s8, [#allocation3], %s1014_s2, %s1014_s2, %s1015_s17  }
  0x23   :  { %s1016_s20 = smov [#allocation6]   ;;  %s984_s24 = scalar_lea.hbm %s1192_s4, 6144 }
  0x24   :  { %s45_s21 = sshll.u32 %s1016_s20, 4  ;;  %p985_p2 = scmp.ne.s32.totalorder %s1192_s4, %s984_s24  ;;  %s46_s21 = int_to_ptr.vmem [resolvable:$true] %s45_s21 }
  0x25   :  { %p988_p3 = scmp.lt.u32.totalorder %s984_s24, %s1192_s4 }
  0x27   :  { %p990_p4 = pnand %p988_p3, %p985_p2 }
  0x29   :  { %993 = shalt.err (!%p990_p4)
}
  0x2a   :  { %s994_s29 = scalar_lea.vmem %s46_s21, 6144  ;;  %p999_p6 = scmp.lt.s32.totalorder %s46_s21, %s46_s21 }
  0x2b   :  { %p995_p5 = scmp.ne.s32.totalorder %s46_s21, %s994_s29  ;;  %p1000_p7 = scmp.lt.s32.totalorder %s994_s29, %s994_s29 }
  0x2d   :  { %p1001_p8 = por %p1000_p7, %p999_p6 }
  0x2f   :  { %p1002_p9 = pnand %p1001_p8, %p995_p5 }
  0x31   :  { %1005 = shalt.err (!%p1002_p9)
}
  0x32   :  { %51 = dma.hbm_to_vmem [thread:$0]  %s1192_s4, 6144, %s46_s21, [#allocation5], %s1014_s2, %s1014_s2, %s1015_s17  }
  0x33   :  { %1006 = dma.done.wait [#allocation3], 1024  }
  0x34   :  { %1007 = vsyncadd [#allocation3], 4294966272 }
  0x35   :  { %1008 = dma.done.wait [#allocation5], 8192  }
  0x36   :  { %1009 = vsyncadd [#allocation5], 4294959104  ;;  %v1017_v0 = vmov 0.0   ;;  %v85_v1 = vld [vmem:[#allocation4 + $0x8] sm:$0xff]  ;;  %v84_v3 = vld [vmem:[#allocation4] sm:$0xff]  ;;  %vm69_vm0 = vcmask 261120   ;;  %v262_v47 = vlaneseq }
  0x37   :  { %170 = vmatprep.mubr.f32.mxu0 %v1017_v0  ;;  %247 = vmatprep.mubr.f32.mxu1 %v1017_v0  ;;  %v89_v2 = vld [vmem:[#allocation4 + $0x28] sm:$0xff]  ;;  %v88_v5 = vld [vmem:[#allocation4 + $0x20] sm:$0xff]  ;;  %v63_v13 = vld [vmem:[#allocation2 + $0x10] sm:$0xff]  ;;  %vm302_vm2 = vcmask 7168   ;;  %vm383_vm4 = vcmask 1041409   ;;  %vm388_vm5 = vcmask 1041408  }
  0x38   :  { %v822_v4 = vpack.c.bf16 %v89_v2, %v85_v1  ;;  %v93_v6 = vld [vmem:[#allocation4 + $0x48] sm:$0xff]  ;;  %v824_v8 = vpack.c.bf16 %v88_v5, %v84_v3  ;;  %v92_v10 = vld [vmem:[#allocation4 + $0x40] sm:$0xff]  ;;  %v67_v15 = vld [vmem:[#allocation2 + $0x30] sm:$0xff]  ;;  %v71_v18 = vsel %vm69_vm0, %v63_v13, 0.0  ;;  %v1105_v48 = vshrl.u32 %v262_v47, 7 }
  0x39   :  { %v97_v7 = vld [vmem:[#allocation4 + $0x68] sm:$0xff]  ;;  %v96_v11 = vld [vmem:[#allocation4 + $0x60] sm:$0xff]  ;;  %v64_v21 = vld [vmem:[#allocation2 + $0x18] sm:$0xff]  ;;  %v75_v28 = vsel %vm69_vm0, %v67_v15, 0.0  ;;  %vm1020_vm6 = vmmov 0  }
  0x3a   :  { %v826_v9 = vpack.c.bf16 %v97_v7, %v93_v6  ;;  %v61_v12 = vld [vmem:[#allocation2] sm:$0xff]  ;;  %823 = vmatprep.subr.bf16.mxu0 %v822_v4  ;;  %v828_v17 = vpack.c.bf16 %v96_v11, %v92_v10  ;;  %v62_v20 = vld [vmem:[#allocation2 + $0x8] sm:$0xff]  ;;  %v68_v24 = vld [vmem:[#allocation2 + $0x38] sm:$0xff]  ;;  %v78_v26 = vsel %vm69_vm0, %v64_v21, 0.0  ;;  %v264_v49 = vsub.s32 0, %v1105_v48 }
  0x3b   :  { %v65_v14 = vld [vmem:[#allocation2 + $0x20] sm:$0xff]  ;;  %v70_v16 = vsel %vm69_vm0, %v61_v12, 0.0  ;;  %825 = vmatpush1.bf16.msra.mxu0 %v824_v8  ;;  %v66_v22 = vld [vmem:[#allocation2 + $0x28] sm:$0xff]  ;;  %v77_v25 = vsel %vm69_vm0, %v62_v20, 0.0  ;;  %v82_v32 = vsel %vm69_vm0, %v68_v24, 0.0  ;;  %v87_v35 = vld [vmem:[#allocation4 + $0x18] sm:$0xff] }
  0x3c   :  { %v73_v19 = vsel %vm69_vm0, %v65_v14, 0.0  ;;  %827 = vmatprep.subr.bf16.mxu0 %v826_v9  ;;  %v72_v23 = vadd.f32 %v71_v18, %v70_v16  ;;  %v80_v27 = vsel %vm69_vm0, %v66_v22, 0.0  ;;  %v79_v29 = vadd.f32 %v78_v26, %v77_v25  ;;  %v91_v36 = vld [vmem:[#allocation4 + $0x38] sm:$0xff]  ;;  %v86_v37 = vld [vmem:[#allocation4 + $0x10] sm:$0xff]  ;;  %v1111_v50 = vld [vmem:[%s1191_s3] sm:$0xff] }
  0x3d   :  { %v830_v38 = vpack.c.bf16 %v91_v36, %v87_v35  ;;  %v90_v39 = vld [vmem:[#allocation4 + $0x30] sm:$0xff]  ;;  %v95_v40 = vld [vmem:[#allocation4 + $0x58] sm:$0xff]  ;;  %v1116_v51 = vld [vmem:[%s1191_s3 + $0x8] sm:$0xff]  ;;  %v265_v52 = vrot.slane %v1111_v50, %v264_v49  ;;  %v280_v62 = vsub.s32 1, %v1105_v48  ;;  %v1018_v12 = vmov 0  }
  0x3e   :  { %v74_v30 = vadd.f32 %v73_v19, %v72_v23  ;;  %v81_v31 = vadd.f32 %v80_v27, %v79_v29  ;;  %v99_v41 = vld [vmem:[#allocation4 + $0x78] sm:$0xff]  ;;  %v832_v42 = vpack.c.bf16 %v90_v39, %v86_v37  ;;  %v94_v44 = vld [vmem:[#allocation4 + $0x50] sm:$0xff]  ;;  %v269_v53 = vrot.slane %v1116_v51, %v264_v49  ;;  %906 = vset.pattern.permute.xlu1 %v1018_v12  ;;  %v296_v15 = vld [vmem:[%s1189_s1] sm:$0xff] }
  0x3f   :  { %829 = vmatpush1.bf16.msra.mxu0 %v828_v17  ;;  %v834_v43 = vpack.c.bf16 %v99_v41, %v95_v40  ;;  %v98_v45 = vld [vmem:[#allocation4 + $0x70] sm:$0xff]  ;;  %831 = vmatprep.subr.bf16.mxu1 %v830_v38  ;;  %v281_v63 = vrot.slane %v1111_v50, %v280_v62  ;;  %v285_v1 = vrot.slane %v1116_v51, %v280_v62  ;;  %vm298_vm1 = vcmp.eq.f32.partialorder %v296_v15, 0.0  ;;  %v297_v16 = vld [vmem:[%s1189_s1 + $0x8] sm:$0xff] }
  0x40   :  { %v76_v33 = vadd.f32 %v75_v28, %v74_v30  ;;  %v83_v34 = vadd.f32 %v82_v32, %v81_v31  ;;  %833 = vmatpush1.bf16.msra.mxu1 %v832_v42  ;;  %v836_v46 = vpack.c.bf16 %v98_v45, %v94_v44  ;;  %907 = vset.pattern.permute.xlu0 %v1018_v12  ;;  %vm299_vm3 = vcmp.eq.f32.partialorder %v297_v16, 0.0 }
  0x41   :  { %835 = vmatprep.subr.bf16.mxu1 %v834_v43 }
  0x42   :  { %731 = vmatmul.mubr.msk.f32.vlgmr.msra.gmra.mrb[0].mxu0 %vm69_vm0, %v76_v33 }
  0x43   :  { %176 = vmatprep.mubr.f32.mxu0 %v1017_v0 }
  0x44   :  { %837 = vmatpush1.bf16.msra.mxu1 %v836_v46 }
  0x46   :  { %732 = vmatmul.mubr.msk.f32.gmra.mrb[2].mxu0 %vm69_vm0, %v83_v34 }
  0x47   :  { %733 = vmatmul.mubr.msk.f32.vlgmr.msra.gmra.mrb[0].mxu1 %vm69_vm0, %v76_v33 }
  0x48   :  { %253 = vmatprep.mubr.f32.mxu1 %v1017_v0 }
  0x4b   :  { %734 = vmatmul.mubr.msk.f32.gmra.mrb[2].mxu1 %vm69_vm0, %v83_v34 }
  0x4c   :  { %819 = vmatprep.mubr.msk.f32.mxu1 %vm1020_vm6, %v1017_v0 }
 0x115   :  { %v172_v54 = vpop.f32.mrb[0].mxu0 }
 0x116   :  { %v270_v55 = vadd.f32 %v265_v52, %v172_v54  ;;  %v174_v56 = vpop.f32.mrb[1].mxu0 }
 0x117   :  { %v271_v57 = vadd.f32 %v269_v53, %v174_v56 }
 0x118   :  { %908 = vtanh.f32 %v270_v55 }
 0x119   :  { %910 = vtanh.f32 %v271_v57  ;;  %v178_v58 = vpop.f32.mrb[2].mxu0 }
 0x11a   :  { %v272_v59 = vadd.f32 %v265_v52, %v178_v58  ;;  %v180_v60 = vpop.f32.mrb[3].mxu0  ;;  %v249_v13 = vpop.f32.mrb[0].mxu1 }
 0x11b   :  { %v273_v61 = vadd.f32 %v269_v53, %v180_v60  ;;  %v251_v14 = vpop.f32.mrb[1].mxu1 }
 0x11c   :  { %912 = vtanh.f32 %v272_v59 }
 0x11d   :  { %914 = vtanh.f32 %v273_v61 }
 0x11e   :  { %v255_v62 = vpop.f32.mrb[2].mxu1 }
 0x122   :  { %v909_v2 = vpop.eup %908 }
 0x123   :  { %v911_v3 = vpop.eup %910  ;;  %v286_v4 = vmul.f32 %v909_v2, %v281_v63 }
 0x124   :  { %v287_v5 = vmul.f32 %v911_v3, %v285_v1 }
 0x126   :  { %v913_v6 = vpop.eup %912  ;;  %v290_v7 = vadd.f32 %v287_v5, %v286_v4 }
 0x127   :  { %v915_v8 = vpop.eup %914  ;;  %v288_v9 = vmul.f32 %v913_v6, %v281_v63 }
 0x128   :  { %291 = vadd.xlane.f32.xlu0 %v290_v7  ;;  %v289_v10 = vmul.f32 %v915_v8, %v285_v1  ;;  %v257_v1 = vpop.f32.mrb[3].mxu1 }
 0x12a   :  { %v293_v11 = vadd.f32 %v289_v10, %v288_v9 }
 0x12c   :  { %294 = vadd.xlane.f32.xlu0 %v293_v11 }
 0x1b5   :  { %v292_v17 = vpop.xlane.xlu0 %291 }
 0x1b6   :  { %v300_v18 = vsel %vm298_vm1, -1e+09, %v292_v17 }
 0x1b7   :  { %v303_v19 = vsel %vm302_vm2, %v300_v18, -inf }
 0x1b8   :  { %v304_v20 = vrot.slane %v303_v19, 4 }
 0x1b9   :  { %v295_v21 = vpop.xlane.xlu0 %294 }
 0x1ba   :  { %v305_v22 = vmax.f32 %v303_v19, %v304_v20  ;;  %v301_v23 = vsel %vm299_vm3, -1e+09, %v295_v21 }
 0x1bb   :  { %v310_v24 = vsel %vm302_vm2, %v301_v23, -inf }
 0x1bc   :  { %v306_v25 = vrot.slane %v305_v22, 2  ;;  %v311_v26 = vrot.slane %v310_v24, 4 }
 0x1be   :  { %v307_v27 = vmax.f32 %v305_v22, %v306_v25  ;;  %v312_v28 = vmax.f32 %v310_v24, %v311_v26 }
 0x1c0   :  { %v308_v29 = vrot.slane %v307_v27, 1  ;;  %v313_v30 = vrot.slane %v312_v28, 2 }
 0x1c2   :  { %v309_v31 = vmax.f32 %v307_v27, %v308_v29  ;;  %v314_v32 = vmax.f32 %v312_v28, %v313_v30 }
 0x1c4   :  { %v317_v33 = vsub.f32 %v300_v18, %v309_v31  ;;  %v315_v34 = vrot.slane %v314_v32, 1 }
 0x1c6   :  { %v319_v35 = vmul.f32 1.442695, %v317_v33  ;;  %v316_v36 = vmax.f32 %v314_v32, %v315_v34 }
 0x1c8   :  { %916 = vpow2.f32 %v319_v35  ;;  %v318_v37 = vsub.f32 %v301_v23, %v316_v36 }
 0x1ca   :  { %v321_v38 = vmul.f32 1.442695, %v318_v37 }
 0x1cc   :  { %918 = vpow2.f32 %v321_v38 }
 0x1d2   :  { %v917_v39 = vpop.eup %916 }
 0x1d3   :  { %v323_v40 = vsel %vm302_vm2, %v917_v39, 0.0 }
 0x1d4   :  { %v324_v41 = vrot.slane %v323_v40, 4 }
 0x1d6   :  { %v919_v42 = vpop.eup %918  ;;  %v325_v43 = vadd.f32 %v324_v41, %v323_v40 }
 0x1d7   :  { %v330_v44 = vsel %vm302_vm2, %v919_v42, 0.0 }
 0x1d8   :  { %v326_v45 = vrot.slane %v325_v43, 2  ;;  %v331_v46 = vrot.slane %v330_v44, 4 }
 0x1da   :  { %v327_v49 = vadd.f32 %v326_v45, %v325_v43  ;;  %v332_v52 = vadd.f32 %v331_v46, %v330_v44 }
 0x1dc   :  { %v328_v53 = vrot.slane %v327_v49, 1  ;;  %v333_v54 = vrot.slane %v332_v52, 2 }
 0x1de   :  { %v334_v55 = vadd.f32 %v333_v54, %v332_v52  ;;  %v329_v56 = vadd.f32 %v328_v53, %v327_v49 }
 0x1e0   :  { %920 = vrcp.f32 %v329_v56  ;;  %v335_v57 = vrot.slane %v334_v55, 1 }
 0x1e2   :  { %v336_v58 = vadd.f32 %v335_v57, %v334_v55 }
 0x1e4   :  { %922 = vrcp.f32 %v336_v58 }
 0x1ea   :  { %v921_v59 = vpop.eup %920 }
 0x1eb   :  { %v339_v60 = vmul.f32 %v921_v59, %v917_v39  ;;  %v494_v59 = vld [vmem:[#allocation6 + $0x80] sm:$0xff] }
 0x1ed   :  { %343 = vperm.xlu1 %906, %v339_v60   ;;  %v495_v60 = vld [vmem:[#allocation6 + $0x88] sm:$0xff] }
 0x1ee   :  { %v923_v61 = vpop.eup %922 }
 0x1ef   :  { %v340_v63 = vmul.f32 %v923_v61, %v919_v42  ;;  %v478_v61 = vld [vmem:[#allocation6] sm:$0xff] }
 0x1f1   :  { %348 = vperm.xlu1 %906, %v340_v63   ;;  %v479_v63 = vld [vmem:[#allocation6 + $0x8] sm:$0xff] }
 0x26c   :  { %v344_v2 = vpop.permute.xlu1 %343 }
 0x26d   :  { %v351_v3 = vmul.f32 %v344_v2, %v249_v13  ;;  %v352_v4 = vmul.f32 %v344_v2, %v251_v14  ;;  %v497_v2 = vld [vmem:[#allocation6 + $0x98] sm:$0xff] }
 0x26f   :  { %v355_v5 = vrot.slane %v351_v3, 4  ;;  %v361_v6 = vrot.slane %v352_v4, 4 }
 0x270   :  { %v349_v7 = vpop.permute.xlu1 %348 }
 0x271   :  { %v356_v8 = vadd.f32 %v355_v5, %v351_v3  ;;  %v362_v9 = vadd.f32 %v361_v6, %v352_v4  ;;  %v353_v10 = vmul.f32 %v349_v7, %v255_v62  ;;  %v354_v11 = vmul.f32 %v349_v7, %v257_v1  ;;  %v496_v1 = vld [vmem:[#allocation6 + $0x90] sm:$0xff]  ;;  %v481_v6 = vld [vmem:[#allocation6 + $0x18] sm:$0xff]  ;;  %v498_v7 = vld [vmem:[#allocation6 + $0xa0] sm:$0xff] }
 0x272   :  { %v838_v62 = vpack.c.bf16 %v495_v60, %v494_v59  ;;  %v840_v3 = vpack.c.bf16 %v479_v63, %v478_v61  ;;  %v842_v4 = vpack.c.bf16 %v497_v2, %v496_v1  ;;  %v480_v5 = vld [vmem:[#allocation6 + $0x10] sm:$0xff]  ;;  %v514_v59 = vld [vmem:[#allocation6 + $0x120] sm:$0xff]  ;;  %v515_v60 = vld [vmem:[#allocation6 + $0x128] sm:$0xff]  ;;  %v436_v2 = vsub.s32 2, %v1105_v48 }
 0x273   :  { %v357_v12 = vrot.slane %v356_v8, 2  ;;  %v363_v15 = vrot.slane %v362_v9, 2  ;;  %v367_v16 = vrot.slane %v353_v10, 4  ;;  %v373_v17 = vrot.slane %v354_v11, 4 }
 0x274   :  { %839 = vmatprep.subr.bf16.mxu0 %v838_v62  ;;  %v877_v61 = vpack.c.bf16 %v515_v60, %v514_v59  ;;  %v522_v59 = vld [vmem:[#allocation6 + $0x160] sm:$0xff]  ;;  %v523_v60 = vld [vmem:[#allocation6 + $0x168] sm:$0xff] }
 0x275   :  { %v358_v18 = vadd.f32 %v357_v12, %v356_v8  ;;  %v364_v19 = vadd.f32 %v363_v15, %v362_v9  ;;  %v368_v20 = vadd.f32 %v367_v16, %v353_v10  ;;  %v374_v21 = vadd.f32 %v373_v17, %v354_v11  ;;  %v499_v8 = vld [vmem:[#allocation6 + $0xa8] sm:$0xff]  ;;  %841 = vmatpush3.bf16.msra.mxu0 %v840_v3  ;;  %v482_v11 = vld [vmem:[#allocation6 + $0x20] sm:$0xff]  ;;  %v500_v15 = vld [vmem:[#allocation6 + $0xb0] sm:$0xff] }
 0x276   :  { %v844_v9 = vpack.c.bf16 %v481_v6, %v480_v5  ;;  %843 = vmatprep.subr.bf16.mxu0 %v842_v4  ;;  %v846_v10 = vpack.c.bf16 %v499_v8, %v498_v7  ;;  %v483_v12 = vld [vmem:[#allocation6 + $0x28] sm:$0xff]  ;;  %v501_v16 = vld [vmem:[#allocation6 + $0xb8] sm:$0xff]  ;;  %v448_v3 = vsub.s32 3, %v1105_v48  ;;  %v437_v4 = vrot.slane %v1111_v50, %v436_v2 }
 0x277   :  { %v369_v22 = vrot.slane %v368_v20, 2  ;;  %v375_v23 = vrot.slane %v374_v21, 2  ;;  %v359_v24 = vrot.slane %v358_v18, 1  ;;  %v365_v13 = vrot.slane %v364_v19, 1 }
 0x278   :  { %v848_v17 = vpack.c.bf16 %v483_v12, %v482_v11  ;;  %v441_v5 = vrot.slane %v1116_v51, %v436_v2  ;;  %v449_v7 = vrot.slane %v1111_v50, %v448_v3  ;;  %v453_v8 = vrot.slane %v1116_v51, %v448_v3 }
 0x279   :  { %v370_v14 = vadd.f32 %v369_v22, %v368_v20  ;;  %v376_v25 = vadd.f32 %v375_v23, %v374_v21  ;;  %v360_v28 = vadd.f32 %v359_v24, %v358_v18  ;;  %v366_v29 = vadd.f32 %v365_v13, %v364_v19  ;;  %845 = vmatpush3.bf16.msra.mxu0 %v844_v9  ;;  %v484_v19 = vld [vmem:[#allocation6 + $0x30] sm:$0xff]  ;;  %v485_v20 = vld [vmem:[#allocation6 + $0x38] sm:$0xff]  ;;  %v502_v21 = vld [vmem:[#allocation6 + $0xc0] sm:$0xff] }
 0x27a   :  { %847 = vmatprep.subr.bf16.mxu0 %v846_v10  ;;  %v850_v18 = vpack.c.bf16 %v501_v16, %v500_v15  ;;  %v503_v22 = vld [vmem:[#allocation6 + $0xc8] sm:$0xff]  ;;  %v852_v23 = vpack.c.bf16 %v485_v20, %v484_v19  ;;  %v486_v13 = vld [vmem:[#allocation6 + $0x40] sm:$0xff] }
 0x27b   :  { %v371_v26 = vrot.slane %v370_v14, 1  ;;  %v377_v27 = vrot.slane %v376_v25, 1  ;;  %v854_v24 = vpack.c.bf16 %v503_v22, %v502_v21 }
 0x27d   :  { %v372_v30 = vadd.f32 %v371_v26, %v370_v14  ;;  %v378_v31 = vadd.f32 %v377_v27, %v376_v25  ;;  %849 = vmatpush3.bf16.msra.mxu0 %v848_v17  ;;  %v487_v14 = vld [vmem:[#allocation6 + $0x48] sm:$0xff]  ;;  %v504_v25 = vld [vmem:[#allocation6 + $0xd0] sm:$0xff]  ;;  %v505_v26 = vld [vmem:[#allocation6 + $0xd8] sm:$0xff] }
 0x27e   :  { %851 = vmatprep.subr.bf16.mxu0 %v850_v18  ;;  %v856_v27 = vpack.c.bf16 %v487_v14, %v486_v13 }
 0x27f   :  { %v384_v32 = vsel %vm383_vm4, %v372_v30, %v360_v28  ;;  %v385_v33 = vsel %vm383_vm4, %v378_v31, %v366_v29 }
 0x280   :  { %v389_v34 = vsel %vm388_vm5, %v384_v32, 0.0  ;;  %v390_v35 = vsel %vm388_vm5, %v385_v33, 0.0  ;;  %v507_v32 = vld [vmem:[#allocation6 + $0xe8] sm:$0xff] }
 0x281   :  { %v391_v36 = vadd.f32 %v390_v35, %v389_v34  ;;  %853 = vmatpush3.bf16.msra.mxu0 %v852_v23  ;;  %v490_v35 = vld [vmem:[#allocation6 + $0x60] sm:$0xff] }
 0x282   :  { %855 = vmatprep.subr.bf16.mxu0 %v854_v24 }
 0x283   :  { %392 = vadd.xlane.f32.xlu0 %v391_v36  ;;  %v491_v36 = vld [vmem:[#allocation6 + $0x68] sm:$0xff] }
 0x285   :  { %857 = vmatpush3.bf16.msra.mxu0 %v856_v27 }
 0x310   :  { %v393_v37 = vpop.xlane.xlu0 %392 }
 0x311   :  { %v395_v38 = vmul.f32 0.00390625, %v393_v37  ;;  %v508_v37 = vld [vmem:[#allocation6 + $0xf0] sm:$0xff] }
 0x313   :  { %v397_v39 = vrot.slane %v395_v38, 1  ;;  %v1137_v40 = vsub.f32 %v360_v28, %v395_v38  ;;  %v1139_v41 = vsub.f32 %v366_v29, %v395_v38  ;;  %v858_v28 = vpack.c.bf16 %v505_v26, %v504_v25  ;;  %v488_v29 = vld [vmem:[#allocation6 + $0x50] sm:$0xff]  ;;  %v509_v38 = vld [vmem:[#allocation6 + $0xf8] sm:$0xff] }
 0x315   :  { %v1141_v42 = vsub.f32 %v372_v30, %v397_v39  ;;  %v1143_v43 = vsub.f32 %v378_v31, %v397_v39  ;;  %v404_v46 = vmul.f32 %v1137_v40, %v1137_v40  ;;  %v405_v49 = vmul.f32 %v1139_v41, %v1139_v41  ;;  %v489_v30 = vld [vmem:[#allocation6 + $0x58] sm:$0xff]  ;;  %v506_v31 = vld [vmem:[#allocation6 + $0xe0] sm:$0xff]  ;;  %859 = vmatprep.subr.bf16.mxu0 %v858_v28 }
 0x316   :  { %v860_v33 = vpack.c.bf16 %v489_v30, %v488_v29  ;;  %v862_v34 = vpack.c.bf16 %v507_v32, %v506_v31  ;;  %v864_v39 = vpack.c.bf16 %v491_v36, %v490_v35 }
 0x317   :  { %v406_v44 = vmul.f32 %v1141_v42, %v1141_v42  ;;  %v407_v45 = vmul.f32 %v1143_v43, %v1143_v43 }
 0x318   :  { %861 = vmatpush3.bf16.msra.mxu0 %v860_v33 }
 0x319   :  { %v412_v52 = vrot.slane %v406_v44, 7  ;;  %v414_v53 = vrot.slane %v407_v45, 7  ;;  %863 = vmatprep.subr.bf16.mxu0 %v862_v34  ;;  %v866_v44 = vpack.c.bf16 %v509_v38, %v508_v37  ;;  %v492_v45 = vld [vmem:[#allocation6 + $0x70] sm:$0xff] }
 0x31b   :  { %v413_v54 = vsel %vm383_vm4, %v412_v52, %v404_v46  ;;  %v415_v55 = vsel %vm383_vm4, %v414_v53, %v405_v49  ;;  %v493_v46 = vld [vmem:[#allocation6 + $0x78] sm:$0xff]  ;;  %v510_v52 = vld [vmem:[#allocation6 + $0x100] sm:$0xff]  ;;  %v511_v53 = vld [vmem:[#allocation6 + $0x108] sm:$0xff] }
 0x31c   :  { %v418_v56 = vsel %vm388_vm5, %v413_v54, 0.0  ;;  %v419_v57 = vsel %vm388_vm5, %v415_v55, 0.0  ;;  %865 = vmatpush3.bf16.msra.mxu0 %v864_v39  ;;  %v868_v49 = vpack.c.bf16 %v493_v46, %v492_v45  ;;  %v512_v54 = vld [vmem:[#allocation6 + $0x110] sm:$0xff]  ;;  %v1019_v55 = vmov 0.0|0.0   ;;  %v517_v46 = vld [vmem:[#allocation6 + $0x138] sm:$0xff] }
 0x31d   :  { %v420_v58 = vadd.f32 %v419_v57, %v418_v56  ;;  %867 = vmatprep.subr.bf16.mxu0 %v866_v44  ;;  %870 = vmatprep.subr.bf16.mxu1 %v1019_v55  ;;  %v871_v56 = vpack.c.bf16 %v511_v53, %v510_v52  ;;  %v513_v57 = vld [vmem:[#allocation6 + $0x118] sm:$0xff]  ;;  %v516_v45 = vld [vmem:[#allocation6 + $0x130] sm:$0xff]  ;;  %v518_v52 = vld [vmem:[#allocation6 + $0x140] sm:$0xff] }
 0x31e   :  { %v519_v53 = vld [vmem:[#allocation6 + $0x148] sm:$0xff] }
 0x31f   :  { %421 = vadd.xlane.f32.xlu1 %v420_v58  ;;  %872 = vmatpush3.bf16.msra.mxu1 %v871_v56  ;;  %v874_v58 = vpack.c.bf16 %v513_v57, %v512_v54  ;;  %v883_v54 = vpack.c.bf16 %v519_v53, %v518_v52  ;;  %v520_v56 = vld [vmem:[#allocation6 + $0x150] sm:$0xff]  ;;  %v521_v57 = vld [vmem:[#allocation6 + $0x158] sm:$0xff] }
 0x320   :  { %869 = vmatpush3.bf16.msra.mxu0 %v868_v49  ;;  %873 = vmatprep.subr.bf16.mxu1 %v1019_v55  ;;  %v880_v49 = vpack.c.bf16 %v517_v46, %v516_v45 }
 0x323   :  { %875 = vmatpush3.bf16.msra.mxu1 %v874_v58  ;;  %v886_v58 = vpack.c.bf16 %v521_v57, %v520_v56 }
 0x324   :  { %876 = vmatprep.subr.bf16.mxu1 %v1019_v55 }
 0x327   :  { %878 = vmatpush3.bf16.msra.mxu1 %v877_v61  ;;  %v889_v61 = vpack.c.bf16 %v523_v60, %v522_v59 }
 0x328   :  { %879 = vmatprep.subr.bf16.mxu1 %v1019_v55 }
 0x32b   :  { %881 = vmatpush3.bf16.msra.mxu1 %v880_v49 }
 0x32c   :  { %882 = vmatprep.subr.bf16.mxu1 %v1019_v55 }
 0x32f   :  { %884 = vmatpush3.bf16.msra.mxu1 %v883_v54 }
 0x330   :  { %885 = vmatprep.subr.bf16.mxu1 %v1019_v55 }
 0x333   :  { %887 = vmatpush3.bf16.msra.mxu1 %v886_v58 }
 0x334   :  { %888 = vmatprep.subr.bf16.mxu1 %v1019_v55 }
 0x337   :  { %890 = vmatpush3.bf16.msra.mxu1 %v889_v61 }
 0x338   :  { %891 = vmatprep.subr.bf16.mxu1 %v1019_v55 }
 0x3ac   :  { %v422_v62 = vpop.xlane.xlu1 %421 }
 0x3ad   :  { %v423_v63 = vmul.f32 0.00390625, %v422_v62  ;;  %v524_v62 = vld [vmem:[#allocation6 + $0x170] sm:$0xff] }
 0x3af   :  { %v424_v1 = vadd.f32 1e-05, %v423_v63  ;;  %v525_v63 = vld [vmem:[#allocation6 + $0x178] sm:$0xff] }
 0x3b1   :  { %924 = vrsqrt.f32 %v424_v1  ;;  %v892_v1 = vpack.c.bf16 %v525_v63, %v524_v62 }
 0x3b3   :  { %893 = vmatpush3.bf16.msra.mxu1 %v892_v1 }
 0x3bb   :  { %v925_v6 = vpop.eup %924 }
 0x3bc   :  { %v427_v9 = vrot.slane %v925_v6, 1  ;;  %v431_v10 = vmul.f32 %v925_v6, %v1139_v41  ;;  %v430_v11 = vmul.f32 %v925_v6, %v1137_v40 }
 0x3be   :  { %v433_v12 = vmul.f32 %v427_v9, %v1143_v43  ;;  %v443_v15 = vmul.f32 %v441_v5, %v431_v10  ;;  %v432_v16 = vmul.f32 %v427_v9, %v1141_v42  ;;  %v442_v17 = vmul.f32 %v437_v4, %v430_v11 }
 0x3bf   :  { %v682_v10 = vand.u32 127, %v262_v47 }
 0x3c0   :  { %v445_v18 = vmul.f32 %v441_v5, %v433_v12  ;;  %v455_v19 = vadd.f32 %v453_v8, %v443_v15  ;;  %v444_v20 = vmul.f32 %v437_v4, %v432_v16  ;;  %v454_v21 = vadd.f32 %v449_v7, %v442_v17 }
 0x3c1   :  { %vm683_vm7 = vcmp.lt.s32.totalorder %v682_v10, 21 }
 0x3c2   :  { %v457_v22 = vadd.f32 %v453_v8, %v445_v18  ;;  %v463_v23 = vmul.f32 0.70710677, %v455_v19  ;;  %v456_v24 = vadd.f32 %v449_v7, %v444_v20  ;;  %v462_v13 = vmul.f32 0.70710677, %v454_v21 }
 0x3c3   :  { %v459_v31 = vmul.f32 0.5, %v455_v19  ;;  %v458_v33 = vmul.f32 0.5, %v454_v21  ;;  %v698_v21 = vsub.s32 4, %v1105_v48 }
 0x3c4   :  { %v465_v51 = vmul.f32 0.70710677, %v457_v22  ;;  %926 = verf.f32 %v463_v23  ;;  %v464_v14 = vmul.f32 0.70710677, %v456_v24  ;;  %v461_v42 = vmul.f32 0.5, %v457_v22 }
 0x3c5   :  { %928 = verf.f32 %v462_v13  ;;  %v460_v28 = vmul.f32 0.5, %v456_v24  ;;  %v699_v47 = vrot.slane %v1111_v50, %v698_v21 }
 0x3c6   :  { %930 = verf.f32 %v465_v51 }
 0x3c7   :  { %932 = verf.f32 %v464_v14  ;;  %v1021_v14 = vmov 1983009808  }
 0x3ce   :  { %v927_v40 = vpop.eup %926 }
 0x3cf   :  { %v929_v41 = vpop.eup %928  ;;  %v471_v26 = vadd.f32 1.0, %v927_v40  ;;  %v709_v40 = vunpack.c.l.s4 %v1021_v14 }
 0x3d0   :  { %v931_v43 = vpop.eup %930  ;;  %v470_v29 = vadd.f32 1.0, %v929_v41 }
 0x3d1   :  { %v933_v25 = vpop.eup %932  ;;  %v473_v27 = vadd.f32 1.0, %v931_v43  ;;  %v475_v35 = vmul.f32 %v471_v26, %v459_v31  ;;  %v710_v41 = vunpack.c.0.s8 %v709_v40 }
 0x3d2   :  { %v472_v30 = vadd.f32 1.0, %v933_v25  ;;  %v474_v37 = vmul.f32 %v470_v29, %v458_v33 }
 0x3d3   :  { %v477_v32 = vmul.f32 %v473_v27, %v461_v42  ;;  %v713_v43 = vsub.s32 %v710_v41, %v1105_v48 }
 0x3d4   :  { %v476_v34 = vmul.f32 %v472_v30, %v460_v28 }
 0x3d5   :  { %v532_v36 = vrot.slane %v477_v32, 7 }
 0x3d6   :  { %v530_v38 = vrot.slane %v476_v34, 7 }
 0x3d7   :  { %v533_v39 = vsel %vm383_vm4, %v532_v36, %v475_v35 }
 0x3d8   :  { %600 = vmatprep.mubr.f32.mxu0 %v533_v39  ;;  %v531_v44 = vsel %vm383_vm4, %v530_v38, %v474_v37 }
 0x3d9   :  { %601 = vmatmul.mubr.f32.vlgmr.msra.gmra.mrb[4].mxu0 %v531_v44 }
 0x4ac   :  { %v767_v2 = vpop.f32.mrb[4].mxu0 }
 0x4ad   :  { %v768_v3 = vpop.f32.mrb[5].mxu0 }
 0x4ae   :  { %v769_v4 = vadd.f32 %v768_v3, %v767_v2 }
 0x4b0   :  { %v607_v5 = vmul.f32 0.70710677, %v769_v4  ;;  %v606_v7 = vmul.f32 0.5, %v769_v4 }
 0x4b2   :  { %934 = verf.f32 %v607_v5 }
 0x4bc   :  { %v935_v6 = vpop.eup %934 }
 0x4bd   :  { %v609_v8 = vadd.f32 1.0, %v935_v6 }
 0x4bf   :  { %v610_v9 = vmul.f32 %v609_v8, %v606_v7 }
 0x4c1   :  { %820 = vmatmul.mubr.f32.vlgmr.msra.gmra.mrb[4].mxu1 %v610_v9 }
 0x594   :  { %v677_v55 = vpop.f32.mrb[4].mxu1 }
 0x595   :  { %v821_v11 = vpop.f32.mrb[5].mxu1  ;;  %v684_v12 = vsel %vm683_vm7, %v677_v55, -inf }
 0x596   :  { %v685_v15 = vsel %vm388_vm5, %v684_v12, -inf }
 0x597   :  { %686 = vmax.xlane.f32.xlu0 %v685_v15 }
 0x624   :  { %v687_v0 = vpop.xlane.xlu0 %686 }
 0x625   :  { %v688_v16 = vsub.f32 %v684_v12, %v687_v0 }
 0x627   :  { %v689_v17 = vmul.f32 1.442695, %v688_v16 }
 0x629   :  { %936 = vpow2.f32 %v689_v17 }
 0x633   :  { %v937_v18 = vpop.eup %936 }
 0x634   :  { %v691_v19 = vsel %vm388_vm5, %v937_v18, 0.0 }
 0x635   :  { %692 = vadd.xlane.f32.xlu0 %v691_v19 }
 0x6c2   :  { %v693_v20 = vpop.xlane.xlu0 %692 }
 0x6c3   :  { %938 = vrcp.f32 %v693_v20 }
 0x6cd   :  { %v939_v22 = vpop.eup %938 }
 0x6ce   :  { %v695_v23 = vmul.f32 %v939_v22, %v937_v18 }
 0x6d0   :  { %v700_v24 = vmul.f32 %v699_v47, %v695_v23  ;;  %v707_v13 = vcombine.low %v677_v55, %v695_v23 }
 0x6d2   :  { %v701_v51 = vsel %vm388_vm5, %v700_v24, 0.0  ;;  %v714_v42 = vrot.slane %v707_v13, %v713_v43 }
 0x6d3   :  { %702 = vadd.xlane.f32.xlu0 %v701_v51 }
 0x760   :  { %v703_v25 = vpop.xlane.xlu0 %702 }
 0x761   :  { %v721_v26 = vrot.slane %v703_v25, %v713_v43 }
 0x763   :  { %v722_v27 = vcombine.low %v714_v42, %v721_v26 }
 0x765   :  { %724 = vst [vmem:[%s1193_s5] sm:$0x3f] %v722_v27 }
 0x766   :  { %729 = vsyncpa [#allocation3], 1 }
 0x767   :  { %730 = vsyncpa [#allocation5], 1 }

</bundles_post_ra>
